<compile_context>
chip_gen: v6e
topology: v6e:2x2x1
jax: 0.10.0
libtpu: 0.0.40
codegen_flags: <defaults>
</compile_context>

<pallas_src>
import jax
import jax.numpy as jnp
from jax.experimental import pallas as pl
from jax.experimental.pallas import tpu as pltpu


def _round_up(x, m):
    return ((x + m - 1) // m) * m


def _choose_tile(dim, pref, align, slack=1.15):
    """Pick (tile, padded_dim): tile is `align`-aligned, divides padded_dim, and
    padded_dim over-pads `dim` by at most ~`slack`x the minimum achievable."""
    dim_al = _round_up(dim, align)
    pref = max(align, (min(pref, dim_al) // align) * align)
    if dim_al <= pref:
        return dim_al, dim_al
    candidates = list(range(align, pref + 1, align))
    best_pad = min(_round_up(dim_al, t) for t in candidates)
    tile = max(t for t in candidates if _round_up(dim_al, t) <= best_pad * slack)
    return tile, _round_up(dim_al, tile)


def _largest_divisor(dim, align):
    """Largest `align`-multiple <= dim//2 that divides dim (None if impossible)."""
    t = (dim // 2) // align * align
    while t >= align:
        if dim % t == 0:
            return t
        t -= align
    return None


def _split_for_megacore(tm, tn, B_pad, N_pad):
    """v7x has 2 TensorCores: ensure the parallel (i, j) grid has >= 2 blocks
    when the problem is big enough to split.  Prefer splitting the axis whose
    duplicated streamed operand is smaller (splitting N re-reads x, splitting
    M re-reads the weight).  No-op on problems too small to split."""
    if (B_pad // tm) * (N_pad // tn) >= 2:
        return tm, tn
    if B_pad <= N_pad:
        t = _largest_divisor(N_pad, 128)
        if t is not None:
            return tm, t
        t = _largest_divisor(B_pad, 8)
        if t is not None:
            return t, tn
    else:
        t = _largest_divisor(B_pad, 8)
        if t is not None:
            return t, tn
        t = _largest_divisor(N_pad, 128)
        if t is not None:
            return tm, t
    return tm, tn


def _hidden_layer_kernel(x_ref, wt_ref, b_ref, o_ref):
    # x_ref : (tm, tk)  activation tile (already compute dtype; no in-kernel cast)
    # wt_ref: (tk, tn)  pre-packed weight tile, [K, N] layout (lane-dense N)
    # b_ref : (1,  tn)  bias tile (f32)
    # o_ref : (tm, tn)  f32 output tile.  Its block index is constant over k, so
    #         it stays resident in VMEM and serves directly as the accumulator;
    #         it is written back to HBM once per (i, j).
    k = pl.program_id(2)

    @pl.when(k == 0)
    def _():
        o_ref[...] = jnp.zeros_like(o_ref)

    o_ref[...] += jnp.dot(x_ref[...], wt_ref[...],
                          preferred_element_type=jnp.float32)

    @pl.when(k == pl.num_programs(2) - 1)
    def _():
        # Bias added once per output element, sigmoid on the EUP, in place.
        o_ref[...] = jax.nn.sigmoid(o_ref[...] + b_ref[...])


def pack_hidden_layer_params(weight, bias, *, compute_dtype=jnp.bfloat16,
                             tn_pref=1024, tk_pref=512):
    """Pre-pack nn.Linear-style parameters ONCE (e.g. at module init).

    The transpose + cast + pad is a full extra HBM pass over the weight, so it
    must not run on every forward.  Zero-padding K is required for correctness
    (padded K must contribute 0 to the dot).

    weight: [out_features, in_features] f32   bias: [out_features] f32
    """
    N, K = weight.shape
    tn, N_pad = _choose_tile(N, tn_pref, 128)
    tk, K_pad = _choose_tile(K, tk_pref, 128)
    wt = weight.T.astype(compute_dtype)                     # [K, N], MXU-native RHS
    wt_p = jnp.pad(wt, ((0, K_pad - K), (0, N_pad - N)))
    b_p = jnp.pad(bias.astype(jnp.float32).reshape(1, N), ((0, 0), (0, N_pad - N)))
    return dict(wt=wt_p, bias=b_p, N=N, K=K, N_pad=N_pad, K_pad=K_pad,
                tn=tn, tk=tk, compute_dtype=compute_dtype)


def hidden_layer_forward_packed(x, packed, *, tm_pref=512):
    """e = sigmoid(x @ weight.T + bias) using pre-packed params. x: [B, K] f32."""
    B, K = x.shape
    assert K == packed["K"], "weight / input feature mismatch"
    N, N_pad, K_pad = packed["N"], packed["N_pad"], packed["K_pad"]
    tn, tk = packed["tn"], packed["tk"]
    compute_dtype = packed["compute_dtype"]

    tm, B_pad = _choose_tile(B, tm_pref, 8)
    tm, tn = _split_for_megacore(tm, tn, B_pad, N_pad)

    # Fold the bf16 cast into the pad: x is streamed HBM->VMEM every k-step, so
    # pre-casting halves its DMA bytes and removes a per-step VPU convert.
    x_p = x.astype(compute_dtype)
    if B_pad != B or K_pad != K:
        x_p = jnp.pad(x_p, ((0, B_pad - B), (0, K_pad - K)))

    grid = (B_pad // tm, N_pad // tn, K_pad // tk)   # reduction axis last

    itemsize = jnp.dtype(compute_dtype).itemsize
    cost = pl.CostEstimate(
        flops=2 * B_pad * K_pad * N_pad,
        transcendentals=B_pad * N_pad,
        bytes_accessed=(B_pad * K_pad * itemsize * (N_pad // tn)     # x, per j block
                        + K_pad * N_pad * itemsize * (B_pad // tm)   # W, per i block
                        + N_pad * 4 + B_pad * N_pad * 4),
    )

    # Double-buffered x / W / bias tiles + the resident f32 output tile (also
    # double-buffered across (i, j)).  Cap at v7x's 64 MiB physical VMEM; floor
    # at 32 MiB so larger-than-default tiles still fit under v5e's 16 MiB scoped
    # default.
    vmem_bytes = 2 * (tm * tk * itemsize + tk * tn * itemsize + tn * 4) \
        + 2 * tm * tn * 4
    vmem_limit = int(min(64 << 20, max(32 << 20, 2 * vmem_bytes)))

    out = pl.pallas_call(
        _hidden_layer_kernel,
        out_shape=jax.ShapeDtypeStruct((B_pad, N_pad), jnp.float32),
        grid_spec=pltpu.PrefetchScalarGridSpec(
            num_scalar_prefetch=0,
            grid=grid,
            in_specs=[
                pl.BlockSpec((tm, tk), lambda i, j, k: (i, k)),   # x tile
                pl.BlockSpec((tk, tn), lambda i, j, k: (k, j)),   # W^T tile
                pl.BlockSpec((1, tn), lambda i, j, k: (0, j)),    # bias tile
            ],
            out_specs=pl.BlockSpec((tm, tn), lambda i, j, k: (i, j)),
        ),
        compiler_params=pltpu.CompilerParams(
            dimension_semantics=("parallel", "parallel", "arbitrary"),
            vmem_limit_bytes=vmem_limit,
        ),
        cost_estimate=cost,
    )(x_p, packed["wt"], packed["bias"])

    if B_pad != B or N_pad != N:
        out = out[:B, :N]
    return out


def hidden_layer_forward(x, weight, bias, *, compute_dtype=jnp.bfloat16,
                         tm_pref=512, tn_pref=1024, tk_pref=512):
    """Convenience one-shot path.  For repeated calls, pack once with
    pack_hidden_layer_params() and call hidden_layer_forward_packed()."""
    packed = pack_hidden_layer_params(weight, bias, compute_dtype=compute_dtype,
                                      tn_pref=tn_pref, tk_pref=tk_pref)
    return hidden_layer_forward_packed(x, packed, tm_pref=tm_pref)


if __name__ == "__main__":
    # Small shapes consistent with the module: [batch, in_features] feeding
    # nn.Linear(in_features, out_features).
    B, in_features, out_features = 8, 32, 64

    key = jax.random.PRNGKey(0)
    kx, kw, kb = jax.random.split(key, 3)

    x = jax.random.normal(kx, (B, in_features), dtype=jnp.float32)
    bound = 1.0 / (in_features ** 0.5)
    weight = jax.random.uniform(kw, (out_features, in_features), jnp.float32,
                                minval=-bound, maxval=bound)
    bias = jax.random.uniform(kb, (out_features,), jnp.float32,
                              minval=-bound, maxval=bound)

    # Pack once (module-init time), then run the forward.
    packed = pack_hidden_layer_params(weight, bias)
    e = jax.block_until_ready(hidden_layer_forward_packed(x, packed))
    e_ref = jax.nn.sigmoid(x @ weight.T + bias[None, :])
    assert e.shape == (B, out_features)
    # bf16 matmul inputs with f32 accumulation -> ~1e-2 tolerance vs f32 ref.
    assert jnp.allclose(e, e_ref, atol=2e-2, rtol=2e-2)

    # Larger ragged shape exercising the multi-tile (i, j, k) grid, tight
    # padding (N=640 keeps N_pad=640, not 1024) and the megacore split.
    B2, K2, N2 = 256, 1024, 640
    kx2, kw2, kb2 = jax.random.split(jax.random.PRNGKey(1), 3)
    x2 = jax.random.normal(kx2, (B2, K2), dtype=jnp.float32)
    bound2 = 1.0 / (K2 ** 0.5)
    w2 = jax.random.uniform(kw2, (N2, K2), jnp.float32, minval=-bound2, maxval=bound2)
    b2 = jax.random.uniform(kb2, (N2,), jnp.float32, minval=-bound2, maxval=bound2)
    packed2 = pack_hidden_layer_params(w2, b2)
    e2 = jax.block_until_ready(hidden_layer_forward_packed(x2, packed2))
    e2_ref = jax.nn.sigmoid(x2 @ w2.T + b2[None, :])
    assert e2.shape == (B2, N2)
    assert jnp.allclose(e2, e2_ref, atol=2e-2, rtol=2e-2)

    # Float32 escape hatch (tighter accuracy, 2x DMA bytes).
    e3 = jax.block_until_ready(
        hidden_layer_forward(x, weight, bias, compute_dtype=jnp.float32))
    assert jnp.allclose(e3, e_ref, atol=1e-5, rtol=1e-5)

    # TODO(synk): backward / backward_pre / update_weights are stateful
    # training-time methods outside forward(); not implemented here.
    print("KERNEL_OK")
</pallas_src>

<mosaic_0001>
module attributes {stable_mosaic.version = 11 : i64} {
  func.func @_hidden_layer_kernel(%arg0: i32, %arg1: i32, %arg2: i32, %arg3: memref<8x128xbf16, #tpu.memory_space<vmem>>, %arg4: memref<128x128xbf16, #tpu.memory_space<vmem>>, %arg5: memref<1x128xf32, #tpu.memory_space<vmem>>, %arg6: memref<8x128xf32, #tpu.memory_space<vmem>>) attributes {dimension_semantics = [#tpu.dimension_semantics<parallel>, #tpu.dimension_semantics<parallel>, #tpu.dimension_semantics<arbitrary>], iteration_bounds = array<i64: 1, 1, 1>, scalar_prefetch = 0 : i64, scratch_operands = 0 : i64, tpu.core_type = #tpu.core_type<tc>, window_params = [{transform_indices = @transform_0, window_bounds = array<i64: 8, 128>}, {transform_indices = @transform_1, window_bounds = array<i64: 128, 128>}, {transform_indices = @transform_2, window_bounds = array<i64: 1, 128>}, {transform_indices = @transform_3, window_bounds = array<i64: 8, 128>}]} {
    %c0_i32 = arith.constant 0 : i32
    %0 = arith.cmpi eq, %arg2, %c0_i32 : i32
    %1 = arith.extui %0 : i1 to i32
    %c0_i32_0 = arith.constant 0 : i32
    %2 = arith.cmpi ne, %1, %c0_i32_0 : i32
    scf.if %2 {
      %cst_10 = arith.constant 0.000000e+00 : f32
      %12 = vector.broadcast %cst_10 : f32 to vector<8x128xf32>
      %c0_11 = arith.constant 0 : index
      %c0_12 = arith.constant 0 : index
      %13 = vector.load %arg6[%c0_11, %c0_12] : memref<8x128xf32, #tpu.memory_space<vmem>>, vector<8x128xf32>
      tpu.vector_store %arg6[%c0_11, %c0_12], %12 {strides = array<i32>} : memref<8x128xf32, #tpu.memory_space<vmem>>, vector<8x128xf32>,
    } else {
    }
    %c0 = arith.constant 0 : index
    %c0_1 = arith.constant 0 : index
    %3 = vector.load %arg6[%c0, %c0_1] : memref<8x128xf32, #tpu.memory_space<vmem>>, vector<8x128xf32>
    %c0_2 = arith.constant 0 : index
    %c0_3 = arith.constant 0 : index
    %4 = vector.load %arg3[%c0_2, %c0_3] : memref<8x128xbf16, #tpu.memory_space<vmem>>, vector<8x128xbf16>
    %c0_4 = arith.constant 0 : index
    %c0_5 = arith.constant 0 : index
    %5 = vector.load %arg4[%c0_4, %c0_5] : memref<128x128xbf16, #tpu.memory_space<vmem>>, vector<128x128xbf16>
    %cst = arith.constant dense<0.000000e+00> : vector<8x128xf32>
    %6 = tpu.matmul %4, %5, %cst {dimension_numbers = #tpu.dot_dimension_numbers<[1], [0], [0], [1], [0, 0, 1, 1], [], []>} : vector<8x128xbf16>, vector<128x128xbf16>, vector<8x128xf32> -> vector<8x128xf32>
    %7 = arith.addf %3, %6 : vector<8x128xf32>
    %c0_6 = arith.constant 0 : index
    %c0_7 = arith.constant 0 : index
    %8 = vector.load %arg6[%c0_6, %c0_7] : memref<8x128xf32, #tpu.memory_space<vmem>>, vector<8x128xf32>
    tpu.vector_store %arg6[%c0_6, %c0_7], %7 {strides = array<i32>} : memref<8x128xf32, #tpu.memory_space<vmem>>, vector<8x128xf32>,
    %c0_i32_8 = arith.constant 0 : i32
    %9 = arith.cmpi eq, %arg2, %c0_i32_8 : i32
    %10 = arith.extui %9 : i1 to i32
    %c0_i32_9 = arith.constant 0 : i32
    %11 = arith.cmpi ne, %10, %c0_i32_9 : i32
    scf.if %11 {
      %c0_10 = arith.constant 0 : index
      %c0_11 = arith.constant 0 : index
      %12 = vector.load %arg6[%c0_10, %c0_11] : memref<8x128xf32, #tpu.memory_space<vmem>>, vector<8x128xf32>
      %c0_12 = arith.constant 0 : index
      %c0_13 = arith.constant 0 : index
      %13 = vector.load %arg5[%c0_12, %c0_13] : memref<1x128xf32, #tpu.memory_space<vmem>>, vector<1x128xf32>
      %14 = vector.broadcast %13 : vector<1x128xf32> to vector<8x128xf32>
      %15 = arith.addf %12, %14 : vector<8x128xf32>
      %16 = arith.negf %15 : vector<8x128xf32>
      %17 = math.exp %16 : vector<8x128xf32>
      %cst_14 = arith.constant 1.000000e+00 : f32
      %18 = vector.broadcast %cst_14 : f32 to vector<8x128xf32>
      %19 = arith.addf %18, %17 : vector<8x128xf32>
      %20 = arith.divf %18, %19 : vector<8x128xf32>
      %c0_15 = arith.constant 0 : index
      %c0_16 = arith.constant 0 : index
      %21 = vector.load %arg6[%c0_15, %c0_16] : memref<8x128xf32, #tpu.memory_space<vmem>>, vector<8x128xf32>
      tpu.vector_store %arg6[%c0_15, %c0_16], %20 {strides = array<i32>} : memref<8x128xf32, #tpu.memory_space<vmem>>, vector<8x128xf32>,
    } else {
    }
    return
  }
  func.func @transform_0(%arg0: i32, %arg1: i32, %arg2: i32) -> (i32, i32) {
    %c0_i32 = arith.constant 0 : i32
    return %arg0, %arg2 : i32, i32
  }
  func.func @transform_1(%arg0: i32, %arg1: i32, %arg2: i32) -> (i32, i32) {
    %c0_i32 = arith.constant 0 : i32
    return %arg2, %arg1 : i32, i32
  }
  func.func @transform_2(%arg0: i32, %arg1: i32, %arg2: i32) -> (i32, i32) {
    %c0_i32 = arith.constant 0 : i32
    %c0_i32_0 = arith.constant 0 : i32
    return %c0_i32, %arg1 : i32, i32
  }
  func.func @transform_3(%arg0: i32, %arg1: i32, %arg2: i32) -> (i32, i32) {
    %c0_i32 = arith.constant 0 : i32
    return %arg0, %arg1 : i32, i32
  }
}

</mosaic_0001>

<bundles_post_ra>
// kernel: tpu_custom_call.1
= control target key start
LH: loop header
LB: loop body
LE: loop exit
PB: predicated region body
PF: predicated region fallthrough
CT: control target
= control target key end

     0   :  { %8 = vsyncpa [#allocation3], 0  ;;  %s353_s0 = inlined_call_operand.hbm [shape: bf16[8,128], index: 0, kind: input, shape index: {}]   ;;  %s354_s1 = inlined_call_operand.hbm [shape: bf16[128,128], index: 1, kind: input, shape index: {}]   ;;  %s355_s2 = inlined_call_operand.vmem [shape: f32[1,128], index: 2, kind: input, shape index: {}]   ;;  %s356_s3 = inlined_call_operand.hbm [shape: f32[8,128], index: 3, kind: output, shape index: {}]  }
   0x1   :  { %9 = vsyncpa [#allocation6], 0 }
   0x2   :  { %10 = vsyncpa [#allocation4], 0  ;;  %s314_s12 = smov [#allocation2]   ;;  %s315_s14 = smov [#allocation5]  }
   0x3   :  { %s17_s13 = sshll.u32 %s314_s12, 4  ;;  %s26_s15 = sshll.u32 %s315_s14, 4  ;;  %s18_s13 = int_to_ptr.vmem [resolvable:$true] %s17_s13  ;;  %s27_s15 = int_to_ptr.vmem [resolvable:$true] %s26_s15 }
   0x4   :  { %s256_s16 = scalar_lea.vmem %s18_s13, 64  ;;  %p261_p1 = scmp.lt.s32.totalorder %s18_s13, %s18_s13 }
   0x5   :  { %p257_p0 = scmp.ne.s32.totalorder %s18_s13, %s256_s16  ;;  %p262_p2 = scmp.lt.s32.totalorder %s256_s16, %s256_s16 }
   0x7   :  { %p263_p3 = por %p262_p2, %p261_p1 }
   0x9   :  { %p264_p4 = pnand %p263_p3, %p257_p0 }
   0xb   :  { %267 = shalt.err (!%p264_p4)
}
   0xc   :  { %20 = dma.hbm_to_vmem [thread:$0]  %s353_s0, 64, %s18_s13, [#allocation3]  }
   0xd   :  { %s276_s19 = scalar_lea.vmem %s27_s15, 1024  ;;  %p281_p6 = scmp.lt.s32.totalorder %s27_s15, %s27_s15 }
   0xe   :  { %p277_p5 = scmp.ne.s32.totalorder %s27_s15, %s276_s19  ;;  %p282_p7 = scmp.lt.s32.totalorder %s276_s19, %s276_s19 }
  0x10   :  { %p283_p8 = por %p282_p7, %p281_p6 }
  0x12   :  { %p284_p9 = pnand %p283_p8, %p277_p5 }
  0x14   :  { %287 = shalt.err (!%p284_p9)
}
  0x15   :  { %s316_s20 = smov 64   ;;  %s317_s21 = smov 4  }
  0x16   :  { %32 = dma.hbm_to_vmem [thread:$0]  %s354_s1, 1024, %s27_s15, [#allocation6], %s316_s20, %s316_s20, %s317_s21  }
  0x17   :  { %308 = dma.done.wait [#allocation3], 64  }
  0x18   :  { %309 = vsyncadd [#allocation3], 4294967232 }
  0x19   :  { %310 = dma.done.wait [#allocation6], 1024  }
  0x1a   :  { %311 = vsyncadd [#allocation6], 4294966272  ;;  %v318_v0 = vmov 0.0   ;;  %vm319_vm0 = vmmov 0   ;;  %v236_v1 = vld [vmem:[#allocation5 + $0x38] sm:$0xff]   ;;  %v237_v2 = vld [vmem:[#allocation5 + $0x30] sm:$0xff]  }
  0x1b   :  { %209 = vmatprep.subr.bf16.mxu0 %v318_v0  ;;  %225 = vmatprep.mubr.msk.bf16.mxu0 %vm319_vm0, %v318_v0  ;;  %v238_v3 = vld [vmem:[#allocation5 + $0x28] sm:$0xff]   ;;  %v239_v4 = vld [vmem:[#allocation5 + $0x20] sm:$0xff]   ;;  %v240_v5 = vld [vmem:[#allocation5 + $0x18] sm:$0xff]   ;;  %s320_s24 = smov [#allocation7]  }
  0x1c   :  { %210 = vmatpush3.bf16.msra.mxu0 %v236_v1  ;;  %v241_v6 = vld [vmem:[#allocation5 + $0x10] sm:$0xff]   ;;  %v242_v7 = vld [vmem:[#allocation5 + $0x8] sm:$0xff]   ;;  %v243_v8 = vld [vmem:[#allocation5] sm:$0xff]   ;;  %s180_s25 = sshll.u32 %s320_s24, 4  ;;  %s181_s25 = int_to_ptr.vmem [resolvable:$true] %s180_s25 }
  0x1d   :  { %211 = vmatprep.subr.bf16.mxu0 %v318_v0  ;;  %v48_v9 = vld [vmem:[#allocation2] sm:$0xf]  ;;  %s288_s26 = scalar_lea.vmem %s181_s25, 128  ;;  %p293_p11 = scmp.lt.s32.totalorder %s181_s25, %s181_s25 }
  0x1e   :  { %v198_v11 = vld [vmem:[%s355_s2] ss:$0 sm:$0xff]  ;;  %p289_p10 = scmp.ne.s32.totalorder %s181_s25, %s288_s26  ;;  %p294_p12 = scmp.lt.s32.totalorder %s288_s26, %s288_s26 }
  0x20   :  { %212 = vmatpush3.bf16.msra.mxu0 %v237_v2  ;;  %p295_p13 = por %p294_p12, %p293_p11 }
  0x21   :  { %213 = vmatprep.subr.bf16.mxu0 %v318_v0 }
  0x22   :  { %p296_p0 = pnand %p295_p13, %p289_p10 }
  0x24   :  { %214 = vmatpush3.bf16.msra.mxu0 %v238_v3 }
  0x25   :  { %215 = vmatprep.subr.bf16.mxu0 %v318_v0 }
  0x28   :  { %216 = vmatpush3.bf16.msra.mxu0 %v239_v4 }
  0x29   :  { %217 = vmatprep.subr.bf16.mxu0 %v318_v0 }
  0x2c   :  { %218 = vmatpush3.bf16.msra.mxu0 %v240_v5 }
  0x2d   :  { %219 = vmatprep.subr.bf16.mxu0 %v318_v0 }
  0x30   :  { %220 = vmatpush3.bf16.msra.mxu0 %v241_v6 }
  0x31   :  { %221 = vmatprep.subr.bf16.mxu0 %v318_v0 }
  0x34   :  { %222 = vmatpush3.bf16.msra.mxu0 %v242_v7 }
  0x35   :  { %223 = vmatprep.subr.bf16.mxu0 %v318_v0 }
  0x38   :  { %224 = vmatpush3.bf16.msra.mxu0 %v243_v8 }
  0x3b   :  { %226 = vmatmul.mubr.bf16.vlgmr.msra.gmra.mxu0 %v48_v9 }
  0xfb   :  { %v147_v10 = vpop.f32.mrf.mxu0 }
  0xfc   :  { %v166_v13 = vadd.f32 %v198_v11, %v147_v10 }
  0xfd   :  { %v227_v12 = vpop.f32.mrf.mxu0 }
  0xfe   :  { %v199_v15 = vmul.f32 -1.442695, %v166_v13 }
  0xff   :  { %v150_v14 = vpop.f32.mrf.mxu0 }
 0x100   :  { %244 = vpow2.f32 %v199_v15 }
 0x101   :  { %v228_v16 = vpop.f32.mrf.mxu0 }
 0x10d   :  { %v245_v17 = vpop.eup %244 }
 0x10e   :  { %v170_v18 = vadd.f32 1.0, %v245_v17 }
 0x110   :  { %246 = vrcp.f32 %v170_v18 }
 0x11d   :  { %v247_v19 = vpop.eup %246 }
 0x11e   :  { %173 = vst [vmem:[#allocation7] sm:$0xff] %v247_v19 }
 0x11f   :  { %299 = shalt.err (!%p296_p0)
}
 0x120   :  { %183 = dma.vmem_to_hbm [thread:$0]  %s181_s25, 128, %s356_s3, [#allocation4]  }
 0x121   :  { %312 = dma.done.wait [#allocation4], 128  }
 0x122   :  { %313 = vsyncadd [#allocation4], 4294967168 }
 0x123   :  { %187 = vsyncpa [#allocation3], 1 }
 0x124   :  { %188 = vsyncpa [#allocation6], 1 }
 0x125   :  { %189 = vsyncpa [#allocation4], 1 }

</bundles_post_ra>
